<compile_context>
chip_gen: v7x
topology: tpu7x:2x2x1
jax: 0.10.0
libtpu: 0.0.40
codegen_flags: <defaults>
</compile_context>

<pallas_src>
import jax
import jax.numpy as jnp
from jax.experimental import pallas as pl
from jax.experimental.pallas import tpu as pltpu

NEG_INF = -1e30  # padded-logit bias so padded action columns get exactly zero probability


def _round_up(x, m):
    return -(-x // m) * m


def _has_bf16_vpu():
    # v6e / v7x have bf16 VALUs; v5e and earlier keep the elementwise phase in f32.
    try:
        kind = jax.devices()[0].device_kind.lower()
    except Exception:
        return False
    return not any(t in kind for t in ("v2", "v3", "v4", "v5"))


def actor_kernel(x_ref, w1_ref, b1_ref, w2_ref, b2_ref, w3_ref, b3_ref, probs_ref):
    # layer 1: (TB,S)bf16 @ (S,128)bf16 -> f32 acc; bias+ReLU in the bias dtype (bf16 or f32)
    x = x_ref[...].astype(jnp.bfloat16)
    h1 = jnp.dot(x, w1_ref[...], preferred_element_type=jnp.float32)
    h1 = jnp.maximum(h1.astype(b1_ref.dtype) + b1_ref[...], 0.0).astype(jnp.bfloat16)
    # layer 2: (TB,128)bf16 @ (128,256)bf16 -> f32 acc; bias+ReLU
    h2 = jnp.dot(h1, w2_ref[...], preferred_element_type=jnp.float32)
    h2 = jnp.maximum(h2.astype(b2_ref.dtype) + b2_ref[...], 0.0).astype(jnp.bfloat16)
    # layer 3: (TB,256)bf16 @ (256,128)bf16 -> f32 logits (padded cols carry -1e30 bias, f32)
    logits = jnp.dot(h2, w3_ref[...], preferred_element_type=jnp.float32) + b3_ref[...]
    # numerically stable softmax over the full 128-lane row (padded cols -> exactly 0)
    m = jnp.max(logits, axis=-1, keepdims=True)
    e = jnp.exp(logits - m)
    denom = jnp.sum(e, axis=-1, keepdims=True)
    r = pl.reciprocal(denom, approx=True)      # EUP slot, nearly free
    r = r * (2.0 - denom * r)                  # one Newton step -> f32-accurate normalization
    probs_ref[...] = (e * r).astype(probs_ref.dtype)


def _build_forward(TB, Bp, S, AP, w_shapes, b_shapes, buffer_weights_once):
    # Weights/biases use constant index maps (VMEM-resident across grid steps); requesting a
    # single pipeline buffer avoids allocating a useless second copy.
    wb_kwargs = {"pipeline_mode": pl.Buffered(1)} if buffer_weights_once else {}
    const2d = lambda shape: pl.BlockSpec(shape, lambda i: (0, 0), **wb_kwargs)
    return pl.pallas_call(
        actor_kernel,
        out_shape=jax.ShapeDtypeStruct((Bp, AP), jnp.bfloat16),
        grid=(Bp // TB,),
        in_specs=[
            pl.BlockSpec((TB, S), lambda i: (i, 0)),   # state tile (double-buffered stream)
            const2d(w_shapes[0]), const2d(b_shapes[0]),
            const2d(w_shapes[1]), const2d(b_shapes[1]),
            const2d(w_shapes[2]), const2d(b_shapes[2]),
        ],
        out_specs=pl.BlockSpec((TB, AP), lambda i: (i, 0)),
        compiler_params=pltpu.CompilerParams(dimension_semantics=("parallel",)),
    )


def actor_forward(state, params, *, tb=1024):
    """Returns Categorical probabilities, padded: shape (round_up(B, TB), 128), bfloat16.

    Consumers should index [:B, :action_size] lazily; the wrapper deliberately does not
    re-slice (that would re-read and re-write the whole output array).
    """
    w1, b1, w2, b2, w3p, b3p = params
    B, S = state.shape
    AP = w3p.shape[1]

    # Batch tiling: big tiles to amortize the ~0.35 us/step overhead, but at least 2 grid
    # steps whenever the batch can be split so v7x's second TensorCore isn't idle.
    TB = min(tb, max(8, _round_up(pl.cdiv(B, 2), 8)))
    Bp = _round_up(B, TB)
    if Bp != B:
        state = jnp.pad(state, ((0, Bp - B), (0, 0)))

    args = (state, w1, b1, w2, b2, w3p, b3p)
    w_shapes = (w1.shape, w2.shape, w3p.shape)
    b_shapes = (b1.shape, b2.shape, b3p.shape)
    try:
        return _build_forward(TB, Bp, S, AP, w_shapes, b_shapes, True)(*args)
    except Exception:
        # pipeline_mode=pl.Buffered(1) is a marginal VMEM optimization; fall back if this
        # JAX/Mosaic build rejects it on top-level pallas_call BlockSpecs.
        return _build_forward(TB, Bp, S, AP, w_shapes, b_shapes, False)(*args)


def init_actor_params(key, state_size, action_size, *, elem_bf16=None):
    """torch.nn.Linear-style init (U(-1/sqrt(fan_in), 1/sqrt(fan_in))).

    Weights are stored in bf16 (native MXU path, half the weight DMA bytes). Layer-1/2
    biases are bf16 on chips with a bf16 VPU (v6e/v7x) else f32; the layer-3 bias stays f32
    (it carries the -1e30 padded-logit bias and feeds the f32 softmax). The layer-3 weight
    and bias are padded to 128 output lanes once, here, so the forward pass never pads.
    """
    if elem_bf16 is None:
        elem_bf16 = _has_bf16_vpu()
    act_dtype = jnp.bfloat16 if elem_bf16 else jnp.float32

    AP = max(128, _round_up(action_size, 128))
    dims = [(state_size, 128), (128, 256), (256, action_size)]
    raw = []
    for fan_in, fan_out in dims:
        key, kw, kb = jax.random.split(key, 3)
        bound = 1.0 / jnp.sqrt(fan_in)
        w = jax.random.uniform(kw, (fan_in, fan_out), jnp.float32, -bound, bound)
        b = jax.random.uniform(kb, (1, fan_out), jnp.float32, -bound, bound)
        raw.append((w, b))

    (w1, b1), (w2, b2), (w3, b3) = raw
    w3p = jnp.pad(w3, ((0, 0), (0, AP - action_size)))                           # zero weights
    b3p = jnp.pad(b3, ((0, 0), (0, AP - action_size)), constant_values=NEG_INF)  # -inf-ish logits
    return (
        w1.astype(jnp.bfloat16), b1.astype(act_dtype),
        w2.astype(jnp.bfloat16), b2.astype(act_dtype),
        w3p.astype(jnp.bfloat16), b3p.astype(jnp.float32),
    )


def actor_reference(state, params):
    """Pure-JAX reference using the same dtypes/math as the kernel (exact division)."""
    w1, b1, w2, b2, w3, b3 = params
    x = state.astype(jnp.bfloat16)
    h1 = jnp.dot(x, w1, preferred_element_type=jnp.float32)
    h1 = jnp.maximum(h1.astype(b1.dtype) + b1, 0.0).astype(jnp.bfloat16)
    h2 = jnp.dot(h1, w2, preferred_element_type=jnp.float32)
    h2 = jnp.maximum(h2.astype(b2.dtype) + b2, 0.0).astype(jnp.bfloat16)
    logits = jnp.dot(h2, w3, preferred_element_type=jnp.float32) + b3
    return jax.nn.softmax(logits, axis=-1)


if __name__ == "__main__":
    key = jax.random.PRNGKey(0)
    k_params, k_state = jax.random.split(key)

    state_size = 16
    action_size = 8
    batch = 8

    params = init_actor_params(k_params, state_size, action_size)
    state = jax.random.normal(k_state, (batch, state_size), jnp.float32)

    probs_padded = actor_forward(state, params)          # (Bp, 128) bf16, lane-dense store
    probs_padded = jax.block_until_ready(probs_padded)

    # Categorical only needs the first `action_size` columns; index lazily at the consumer.
    probs = jnp.asarray(probs_padded[:batch, :action_size], jnp.float32)
    ref = jnp.asarray(actor_reference(state, params)[:batch, :action_size])

    assert probs.shape == (batch, action_size)
    # bf16 output quantization dominates the residual error; normalization itself is f32-exact.
    assert jnp.allclose(jnp.sum(probs, axis=-1), 1.0, atol=5e-3)
    assert jnp.allclose(probs, ref, atol=5e-3, rtol=2e-2)

    # TODO(synk): torch.distributions.Categorical sampling/log_prob is host-side glue, not a
    # kernel op; the kernel returns the softmax probabilities that parameterize it.
    print("KERNEL_OK")
</pallas_src>

<mosaic_0001>
module attributes {stable_mosaic.version = 11 : i64} {
  func.func @actor_kernel(%arg0: i32, %arg1: memref<8x16xf32, #tpu.memory_space<vmem>>, %arg2: memref<16x128xbf16, #tpu.memory_space<vmem>>, %arg3: memref<1x128xbf16, #tpu.memory_space<vmem>>, %arg4: memref<128x256xbf16, #tpu.memory_space<vmem>>, %arg5: memref<1x256xbf16, #tpu.memory_space<vmem>>, %arg6: memref<256x128xbf16, #tpu.memory_space<vmem>>, %arg7: memref<1x128xf32, #tpu.memory_space<vmem>>, %arg8: memref<8x128xbf16, #tpu.memory_space<vmem>>) attributes {dimension_semantics = [#tpu.dimension_semantics<parallel>], iteration_bounds = array<i64: 1>, scalar_prefetch = 0 : i64, scratch_operands = 0 : i64, tpu.core_type = #tpu.core_type<tc>, window_params = [{transform_indices = @transform_0, window_bounds = array<i64: 8, 16>}, {pipeline_mode = #tpu.pipeline_mode<synchronous>, transform_indices = @transform_1, window_bounds = array<i64: 16, 128>}, {pipeline_mode = #tpu.pipeline_mode<synchronous>, transform_indices = @transform_2, window_bounds = array<i64: 1, 128>}, {pipeline_mode = #tpu.pipeline_mode<synchronous>, transform_indices = @transform_3, window_bounds = array<i64: 128, 256>}, {pipeline_mode = #tpu.pipeline_mode<synchronous>, transform_indices = @transform_4, window_bounds = array<i64: 1, 256>}, {pipeline_mode = #tpu.pipeline_mode<synchronous>, transform_indices = @transform_5, window_bounds = array<i64: 256, 128>}, {pipeline_mode = #tpu.pipeline_mode<synchronous>, transform_indices = @transform_6, window_bounds = array<i64: 1, 128>}, {transform_indices = @transform_7, window_bounds = array<i64: 8, 128>}]} {
    %c0 = arith.constant 0 : index
    %c0_0 = arith.constant 0 : index
    %0 = vector.load %arg1[%c0, %c0_0] : memref<8x16xf32, #tpu.memory_space<vmem>>, vector<8x16xf32>
    %1 = arith.truncf %0 : vector<8x16xf32> to vector<8x16xbf16>
    %c0_1 = arith.constant 0 : index
    %c0_2 = arith.constant 0 : index
    %2 = vector.load %arg2[%c0_1, %c0_2] : memref<16x128xbf16, #tpu.memory_space<vmem>>, vector<16x128xbf16>
    %cst = arith.constant dense<0.000000e+00> : vector<8x128xf32>
    %3 = tpu.matmul %1, %2, %cst {dimension_numbers = #tpu.dot_dimension_numbers<[1], [0], [0], [1], [0, 0, 1, 1], [], []>} : vector<8x16xbf16>, vector<16x128xbf16>, vector<8x128xf32> -> vector<8x128xf32>
    %4 = arith.truncf %3 : vector<8x128xf32> to vector<8x128xbf16>
    %c0_3 = arith.constant 0 : index
    %c0_4 = arith.constant 0 : index
    %5 = vector.load %arg3[%c0_3, %c0_4] : memref<1x128xbf16, #tpu.memory_space<vmem>>, vector<1x128xbf16>
    %6 = vector.broadcast %5 : vector<1x128xbf16> to vector<8x128xbf16>
    %7 = arith.addf %4, %6 : vector<8x128xbf16>
    %cst_5 = arith.constant 0.000000e+00 : bf16
    %8 = vector.broadcast %cst_5 : bf16 to vector<8x128xbf16>
    %9 = arith.maximumf %7, %8 : vector<8x128xbf16>
    %c0_6 = arith.constant 0 : index
    %c0_7 = arith.constant 0 : index
    %10 = vector.load %arg4[%c0_6, %c0_7] : memref<128x256xbf16, #tpu.memory_space<vmem>>, vector<128x256xbf16>
    %cst_8 = arith.constant dense<0.000000e+00> : vector<8x256xf32>
    %11 = tpu.matmul %9, %10, %cst_8 {dimension_numbers = #tpu.dot_dimension_numbers<[1], [0], [0], [1], [0, 0, 1, 1], [], []>} : vector<8x128xbf16>, vector<128x256xbf16>, vector<8x256xf32> -> vector<8x256xf32>
    %12 = arith.truncf %11 : vector<8x256xf32> to vector<8x256xbf16>
    %c0_9 = arith.constant 0 : index
    %c0_10 = arith.constant 0 : index
    %13 = vector.load %arg5[%c0_9, %c0_10] : memref<1x256xbf16, #tpu.memory_space<vmem>>, vector<1x256xbf16>
    %14 = vector.broadcast %13 : vector<1x256xbf16> to vector<8x256xbf16>
    %15 = arith.addf %12, %14 : vector<8x256xbf16>
    %cst_11 = arith.constant 0.000000e+00 : bf16
    %16 = vector.broadcast %cst_11 : bf16 to vector<8x256xbf16>
    %17 = arith.maximumf %15, %16 : vector<8x256xbf16>
    %c0_12 = arith.constant 0 : index
    %c0_13 = arith.constant 0 : index
    %18 = vector.load %arg6[%c0_12, %c0_13] : memref<256x128xbf16, #tpu.memory_space<vmem>>, vector<256x128xbf16>
    %cst_14 = arith.constant dense<0.000000e+00> : vector<8x128xf32>
    %19 = tpu.matmul %17, %18, %cst_14 {dimension_numbers = #tpu.dot_dimension_numbers<[1], [0], [0], [1], [0, 0, 1, 1], [], []>} : vector<8x256xbf16>, vector<256x128xbf16>, vector<8x128xf32> -> vector<8x128xf32>
    %c0_15 = arith.constant 0 : index
    %c0_16 = arith.constant 0 : index
    %20 = vector.load %arg7[%c0_15, %c0_16] : memref<1x128xf32, #tpu.memory_space<vmem>>, vector<1x128xf32>
    %21 = vector.broadcast %20 : vector<1x128xf32> to vector<8x128xf32>
    %22 = arith.addf %19, %21 : vector<8x128xf32>
    %cst_17 = arith.constant dense<0xFF800000> : vector<8xf32>
    %23 = vector.multi_reduction <maximumf>, %22, %cst_17 [1] : vector<8x128xf32> to vector<8xf32>
    %24 = vector.shape_cast %23 : vector<8xf32> to vector<8x1xf32>
    %25 = vector.broadcast %24 : vector<8x1xf32> to vector<8x128xf32>
    %26 = arith.subf %22, %25 : vector<8x128xf32>
    %27 = math.exp %26 : vector<8x128xf32>
    %cst_18 = arith.constant dense<0.000000e+00> : vector<8xf32>
    %28 = vector.multi_reduction <add>, %27, %cst_18 [1] : vector<8x128xf32> to vector<8xf32>
    %29 = vector.shape_cast %28 : vector<8xf32> to vector<8x1xf32>
    %30 = tpu.reciprocal %29 {approx = true} : vector<8x1xf32> -> vector<8x1xf32>
    %31 = arith.mulf %29, %30 : vector<8x1xf32>
    %cst_19 = arith.constant 2.000000e+00 : f32
    %32 = vector.broadcast %cst_19 : f32 to vector<8x1xf32>
    %33 = arith.subf %32, %31 : vector<8x1xf32>
    %34 = arith.mulf %30, %33 : vector<8x1xf32>
    %35 = vector.broadcast %34 : vector<8x1xf32> to vector<8x128xf32>
    %36 = arith.mulf %27, %35 : vector<8x128xf32>
    %37 = arith.truncf %36 : vector<8x128xf32> to vector<8x128xbf16>
    %c0_20 = arith.constant 0 : index
    %c0_21 = arith.constant 0 : index
    %38 = vector.load %arg8[%c0_20, %c0_21] : memref<8x128xbf16, #tpu.memory_space<vmem>>, vector<8x128xbf16>
    tpu.vector_store %arg8[%c0_20, %c0_21], %37 {strides = array<i32>} : memref<8x128xbf16, #tpu.memory_space<vmem>>, vector<8x128xbf16>,
    return
  }
  func.func @transform_0(%arg0: i32) -> (i32, i32) {
    %c0_i32 = arith.constant 0 : i32
    %c0_i32_0 = arith.constant 0 : i32
    return %arg0, %c0_i32 : i32, i32
  }
  func.func @transform_1(%arg0: i32) -> (i32, i32) {
    %c0_i32 = arith.constant 0 : i32
    %c0_i32_0 = arith.constant 0 : i32
    %c0_i32_1 = arith.constant 0 : i32
    return %c0_i32, %c0_i32_0 : i32, i32
  }
  func.func @transform_2(%arg0: i32) -> (i32, i32) {
    %c0_i32 = arith.constant 0 : i32
    %c0_i32_0 = arith.constant 0 : i32
    %c0_i32_1 = arith.constant 0 : i32
    return %c0_i32, %c0_i32_0 : i32, i32
  }
  func.func @transform_3(%arg0: i32) -> (i32, i32) {
    %c0_i32 = arith.constant 0 : i32
    %c0_i32_0 = arith.constant 0 : i32
    %c0_i32_1 = arith.constant 0 : i32
    return %c0_i32, %c0_i32_0 : i32, i32
  }
  func.func @transform_4(%arg0: i32) -> (i32, i32) {
    %c0_i32 = arith.constant 0 : i32
    %c0_i32_0 = arith.constant 0 : i32
    %c0_i32_1 = arith.constant 0 : i32
    return %c0_i32, %c0_i32_0 : i32, i32
  }
  func.func @transform_5(%arg0: i32) -> (i32, i32) {
    %c0_i32 = arith.constant 0 : i32
    %c0_i32_0 = arith.constant 0 : i32
    %c0_i32_1 = arith.constant 0 : i32
    return %c0_i32, %c0_i32_0 : i32, i32
  }
  func.func @transform_6(%arg0: i32) -> (i32, i32) {
    %c0_i32 = arith.constant 0 : i32
    %c0_i32_0 = arith.constant 0 : i32
    %c0_i32_1 = arith.constant 0 : i32
    return %c0_i32, %c0_i32_0 : i32, i32
  }
  func.func @transform_7(%arg0: i32) -> (i32, i32) {
    %c0_i32 = arith.constant 0 : i32
    %c0_i32_0 = arith.constant 0 : i32
    return %arg0, %c0_i32 : i32, i32
  }
}

module attributes {stable_mosaic.version = 11 : i64} {
  func.func @actor_kernel(%arg0: i32, %arg1: memref<8x16xf32, #tpu.memory_space<vmem>>, %arg2: memref<16x128xbf16, #tpu.memory_space<vmem>>, %arg3: memref<1x128xbf16, #tpu.memory_space<vmem>>, %arg4: memref<128x256xbf16, #tpu.memory_space<vmem>>, %arg5: memref<1x256xbf16, #tpu.memory_space<vmem>>, %arg6: memref<256x128xbf16, #tpu.memory_space<vmem>>, %arg7: memref<1x128xf32, #tpu.memory_space<vmem>>, %arg8: memref<8x128xbf16, #tpu.memory_space<vmem>>) attributes {dimension_semantics = [#tpu.dimension_semantics<parallel>], iteration_bounds = array<i64: 1>, scalar_prefetch = 0 : i64, scratch_operands = 0 : i64, tpu.core_type = #tpu.core_type<tc>, window_params = [{transform_indices = @transform_0, window_bounds = array<i64: 8, 16>}, {pipeline_mode = #tpu.pipeline_mode<synchronous>, transform_indices = @transform_1, window_bounds = array<i64: 16, 128>}, {pipeline_mode = #tpu.pipeline_mode<synchronous>, transform_indices = @transform_2, window_bounds = array<i64: 1, 128>}, {pipeline_mode = #tpu.pipeline_mode<synchronous>, transform_indices = @transform_3, window_bounds = array<i64: 128, 256>}, {pipeline_mode = #tpu.pipeline_mode<synchronous>, transform_indices = @transform_4, window_bounds = array<i64: 1, 256>}, {pipeline_mode = #tpu.pipeline_mode<synchronous>, transform_indices = @transform_5, window_bounds = array<i64: 256, 128>}, {pipeline_mode = #tpu.pipeline_mode<synchronous>, transform_indices = @transform_6, window_bounds = array<i64: 1, 128>}, {transform_indices = @transform_7, window_bounds = array<i64: 8, 128>}]} {
    %c0 = arith.constant 0 : index
    %c0_0 = arith.constant 0 : index
    %0 = vector.load %arg1[%c0, %c0_0] : memref<8x16xf32, #tpu.memory_space<vmem>>, vector<8x16xf32>
    %1 = arith.truncf %0 : vector<8x16xf32> to vector<8x16xbf16>
    %c0_1 = arith.constant 0 : index
    %c0_2 = arith.constant 0 : index
    %2 = vector.load %arg2[%c0_1, %c0_2] : memref<16x128xbf16, #tpu.memory_space<vmem>>, vector<16x128xbf16>
    %cst = arith.constant dense<0.000000e+00> : vector<8x128xf32>
    %3 = tpu.matmul %1, %2, %cst {dimension_numbers = #tpu.dot_dimension_numbers<[1], [0], [0], [1], [0, 0, 1, 1], [], []>} : vector<8x16xbf16>, vector<16x128xbf16>, vector<8x128xf32> -> vector<8x128xf32>
    %4 = arith.truncf %3 : vector<8x128xf32> to vector<8x128xbf16>
    %c0_3 = arith.constant 0 : index
    %c0_4 = arith.constant 0 : index
    %5 = vector.load %arg3[%c0_3, %c0_4] : memref<1x128xbf16, #tpu.memory_space<vmem>>, vector<1x128xbf16>
    %6 = vector.broadcast %5 : vector<1x128xbf16> to vector<8x128xbf16>
    %7 = arith.addf %4, %6 : vector<8x128xbf16>
    %cst_5 = arith.constant 0.000000e+00 : bf16
    %8 = vector.broadcast %cst_5 : bf16 to vector<8x128xbf16>
    %9 = arith.maximumf %7, %8 : vector<8x128xbf16>
    %c0_6 = arith.constant 0 : index
    %c0_7 = arith.constant 0 : index
    %10 = vector.load %arg4[%c0_6, %c0_7] : memref<128x256xbf16, #tpu.memory_space<vmem>>, vector<128x256xbf16>
    %cst_8 = arith.constant dense<0.000000e+00> : vector<8x256xf32>
    %11 = tpu.matmul %9, %10, %cst_8 {dimension_numbers = #tpu.dot_dimension_numbers<[1], [0], [0], [1], [0, 0, 1, 1], [], []>} : vector<8x128xbf16>, vector<128x256xbf16>, vector<8x256xf32> -> vector<8x256xf32>
    %12 = arith.truncf %11 : vector<8x256xf32> to vector<8x256xbf16>
    %c0_9 = arith.constant 0 : index
    %c0_10 = arith.constant 0 : index
    %13 = vector.load %arg5[%c0_9, %c0_10] : memref<1x256xbf16, #tpu.memory_space<vmem>>, vector<1x256xbf16>
    %14 = vector.broadcast %13 : vector<1x256xbf16> to vector<8x256xbf16>
    %15 = arith.addf %12, %14 : vector<8x256xbf16>
    %cst_11 = arith.constant 0.000000e+00 : bf16
    %16 = vector.broadcast %cst_11 : bf16 to vector<8x256xbf16>
    %17 = arith.maximumf %15, %16 : vector<8x256xbf16>
    %c0_12 = arith.constant 0 : index
    %c0_13 = arith.constant 0 : index
    %18 = vector.load %arg6[%c0_12, %c0_13] : memref<256x128xbf16, #tpu.memory_space<vmem>>, vector<256x128xbf16>
    %cst_14 = arith.constant dense<0.000000e+00> : vector<8x128xf32>
    %19 = tpu.matmul %17, %18, %cst_14 {dimension_numbers = #tpu.dot_dimension_numbers<[1], [0], [0], [1], [0, 0, 1, 1], [], []>} : vector<8x256xbf16>, vector<256x128xbf16>, vector<8x128xf32> -> vector<8x128xf32>
    %c0_15 = arith.constant 0 : index
    %c0_16 = arith.constant 0 : index
    %20 = vector.load %arg7[%c0_15, %c0_16] : memref<1x128xf32, #tpu.memory_space<vmem>>, vector<1x128xf32>
    %21 = vector.broadcast %20 : vector<1x128xf32> to vector<8x128xf32>
    %22 = arith.addf %19, %21 : vector<8x128xf32>
    %cst_17 = arith.constant dense<0xFF800000> : vector<8xf32>
    %23 = vector.multi_reduction <maximumf>, %22, %cst_17 [1] : vector<8x128xf32> to vector<8xf32>
    %24 = vector.shape_cast %23 : vector<8xf32> to vector<8x1xf32>
    %25 = vector.broadcast %24 : vector<8x1xf32> to vector<8x128xf32>
    %26 = arith.subf %22, %25 : vector<8x128xf32>
    %27 = math.exp %26 : vector<8x128xf32>
    %cst_18 = arith.constant dense<0.000000e+00> : vector<8xf32>
    %28 = vector.multi_reduction <add>, %27, %cst_18 [1] : vector<8x128xf32> to vector<8xf32>
    %29 = vector.shape_cast %28 : vector<8xf32> to vector<8x1xf32>
    %30 = tpu.reciprocal %29 {approx = true} : vector<8x1xf32> -> vector<8x1xf32>
    %31 = arith.mulf %29, %30 : vector<8x1xf32>
    %cst_19 = arith.constant 2.000000e+00 : f32
    %32 = vector.broadcast %cst_19 : f32 to vector<8x1xf32>
    %33 = arith.subf %32, %31 : vector<8x1xf32>
    %34 = arith.mulf %30, %33 : vector<8x1xf32>
    %35 = vector.broadcast %34 : vector<8x1xf32> to vector<8x128xf32>
    %36 = arith.mulf %27, %35 : vector<8x128xf32>
    %37 = arith.truncf %36 : vector<8x128xf32> to vector<8x128xbf16>
    %c0_20 = arith.constant 0 : index
    %c0_21 = arith.constant 0 : index
    %38 = vector.load %arg8[%c0_20, %c0_21] : memref<8x128xbf16, #tpu.memory_space<vmem>>, vector<8x128xbf16>
    tpu.vector_store %arg8[%c0_20, %c0_21], %37 {strides = array<i32>} : memref<8x128xbf16, #tpu.memory_space<vmem>>, vector<8x128xbf16>,
    return
  }
  func.func @transform_0(%arg0: i32) -> (i32, i32) {
    %c0_i32 = arith.constant 0 : i32
    %c0_i32_0 = arith.constant 0 : i32
    return %arg0, %c0_i32 : i32, i32
  }
  func.func @transform_1(%arg0: i32) -> (i32, i32) {
    %c0_i32 = arith.constant 0 : i32
    %c0_i32_0 = arith.constant 0 : i32
    %c0_i32_1 = arith.constant 0 : i32
    return %c0_i32, %c0_i32_0 : i32, i32
  }
  func.func @transform_2(%arg0: i32) -> (i32, i32) {
    %c0_i32 = arith.constant 0 : i32
    %c0_i32_0 = arith.constant 0 : i32
    %c0_i32_1 = arith.constant 0 : i32
    return %c0_i32, %c0_i32_0 : i32, i32
  }
  func.func @transform_3(%arg0: i32) -> (i32, i32) {
    %c0_i32 = arith.constant 0 : i32
    %c0_i32_0 = arith.constant 0 : i32
    %c0_i32_1 = arith.constant 0 : i32
    return %c0_i32, %c0_i32_0 : i32, i32
  }
  func.func @transform_4(%arg0: i32) -> (i32, i32) {
    %c0_i32 = arith.constant 0 : i32
    %c0_i32_0 = arith.constant 0 : i32
    %c0_i32_1 = arith.constant 0 : i32
    return %c0_i32, %c0_i32_0 : i32, i32
  }
  func.func @transform_5(%arg0: i32) -> (i32, i32) {
    %c0_i32 = arith.constant 0 : i32
    %c0_i32_0 = arith.constant 0 : i32
    %c0_i32_1 = arith.constant 0 : i32
    return %c0_i32, %c0_i32_0 : i32, i32
  }
  func.func @transform_6(%arg0: i32) -> (i32, i32) {
    %c0_i32 = arith.constant 0 : i32
    %c0_i32_0 = arith.constant 0 : i32
    %c0_i32_1 = arith.constant 0 : i32
    return %c0_i32, %c0_i32_0 : i32, i32
  }
  func.func @transform_7(%arg0: i32) -> (i32, i32) {
    %c0_i32 = arith.constant 0 : i32
    %c0_i32_0 = arith.constant 0 : i32
    return %arg0, %c0_i32 : i32, i32
  }
}

</mosaic_0001>

<bundles_post_ra>
// kernel: tpu_custom_call.1
= control target key start
LH: loop header
LB: loop body
LE: loop exit
PB: predicated region body
PF: predicated region fallthrough
CT: control target
= control target key end

     0   :  { %12 = vsyncpa [#allocation3], 0  ;;  %s907_s0 = inlined_call_operand.hbm [shape: f32[8,16], index: 0, kind: input, shape index: {}]   ;;  %s908_s1 = inlined_call_operand.hbm [shape: bf16[16,128], index: 1, kind: input, shape index: {}]   ;;  %s909_s2 = inlined_call_operand.vmem [shape: bf16[1,128], index: 2, kind: input, shape index: {}]   ;;  %s910_s3 = inlined_call_operand.hbm [shape: bf16[128,256], index: 3, kind: input, shape index: {}]   ;;  %s911_s4 = inlined_call_operand.vmem [shape: bf16[1,256], index: 4, kind: input, shape index: {}]   ;;  %s912_s5 = inlined_call_operand.hbm [shape: bf16[256,128], index: 5, kind: input, shape index: {}]   ;;  %s913_s6 = inlined_call_operand.vmem [shape: f32[1,128], index: 6, kind: input, shape index: {}]   ;;  %s914_s7 = inlined_call_operand.hbm [shape: bf16[8,128], index: 7, kind: output, shape index: {}]  }
   0x1   :  { %13 = vsyncpa [#allocation6], 0 }
   0x2   :  { %14 = vsyncpa [#allocation9], 0 }
   0x3   :  { %15 = vsyncpa [#allocation4], 0  ;;  %s775_s24 = smov [#allocation5]   ;;  %s657_s28 = scalar_lea.hbm %s908_s1, 128 }
   0x4   :  { %s31_s25 = sshll.u32 %s775_s24, 4  ;;  %p658_p0 = scmp.ne.s32.totalorder %s908_s1, %s657_s28  ;;  %s32_s25 = int_to_ptr.vmem [resolvable:$true] %s31_s25 }
   0x5   :  { %p661_p1 = scmp.lt.u32.totalorder %s657_s28, %s908_s1 }
   0x7   :  { %p663_p2 = pnand %p661_p1, %p658_p0 }
   0x9   :  { %666 = shalt.err (!%p663_p2)
}
   0xa   :  { %s667_s10 = scalar_lea.vmem %s32_s25, 128  ;;  %p672_p4 = scmp.lt.s32.totalorder %s32_s25, %s32_s25 }
   0xb   :  { %p668_p3 = scmp.ne.s32.totalorder %s32_s25, %s667_s10  ;;  %p673_p5 = scmp.lt.s32.totalorder %s667_s10, %s667_s10 }
   0xd   :  { %p674_p6 = por %p673_p5, %p672_p4 }
   0xf   :  { %p675_p7 = pnand %p674_p6, %p668_p3 }
  0x11   :  { %678 = shalt.err (!%p675_p7)
}
  0x12   :  { %s776_s11 = smov 64   ;;  %s777_s12 = smov 4  }
  0x13   :  { %37 = dma.hbm_to_vmem [thread:$0]  %s908_s1, 128, %s32_s25, [#allocation6], %s776_s11, %s776_s11, %s777_s12  }
  0x14   :  { %s778_s15 = smov [#allocation2]   ;;  %s779_s17 = smov [#allocation7]  }
  0x15   :  { %s22_s16 = sshll.u32 %s778_s15, 4  ;;  %s45_s18 = sshll.u32 %s779_s17, 4  ;;  %s23_s16 = int_to_ptr.vmem [resolvable:$true] %s22_s16  ;;  %s46_s18 = int_to_ptr.vmem [resolvable:$true] %s45_s18 }
  0x16   :  { %s679_s21 = scalar_lea.hbm %s907_s0, 128 }
  0x17   :  { %p680_p8 = scmp.ne.s32.totalorder %s907_s0, %s679_s21  ;;  %p683_p9 = scmp.lt.u32.totalorder %s679_s21, %s907_s0 }
  0x19   :  { %p685_p10 = pnand %p683_p9, %p680_p8 }
  0x1b   :  { %688 = shalt.err (!%p685_p10)
}
  0x1c   :  { %s689_s1 = scalar_lea.vmem %s23_s16, 128  ;;  %p694_p12 = scmp.lt.s32.totalorder %s23_s16, %s23_s16 }
  0x1d   :  { %p690_p11 = scmp.ne.s32.totalorder %s23_s16, %s689_s1  ;;  %p695_p13 = scmp.lt.s32.totalorder %s689_s1, %s689_s1 }
  0x1f   :  { %p696_p0 = por %p695_p13, %p694_p12 }
  0x21   :  { %p697_p1 = pnand %p696_p0, %p690_p11 }
  0x23   :  { %700 = shalt.err (!%p697_p1)
}
  0x24   :  { %25 = dma.hbm_to_vmem [thread:$0]  %s907_s0, 128, %s23_s16, [#allocation3]  }
  0x25   :  { %s701_s30 = scalar_lea.hbm %s910_s3, 2048 }
  0x26   :  { %p702_p2 = scmp.ne.s32.totalorder %s910_s3, %s701_s30  ;;  %p705_p3 = scmp.lt.u32.totalorder %s701_s30, %s910_s3 }
  0x28   :  { %p707_p4 = pnand %p705_p3, %p702_p2 }
  0x2a   :  { %710 = shalt.err (!%p707_p4)
}
  0x2b   :  { %s711_s14 = scalar_lea.vmem %s46_s18, 2048  ;;  %p716_p6 = scmp.lt.s32.totalorder %s46_s18, %s46_s18 }
  0x2c   :  { %p712_p5 = scmp.ne.s32.totalorder %s46_s18, %s711_s14  ;;  %p717_p7 = scmp.lt.s32.totalorder %s711_s14, %s711_s14 }
  0x2e   :  { %p718_p8 = por %p717_p7, %p716_p6 }
  0x30   :  { %p719_p9 = pnand %p718_p8, %p712_p5 }
  0x32   :  { %722 = shalt.err (!%p719_p9)
}
  0x33   :  { %s780_s0 = smov 128   ;;  %s781_s15 = smov 8  }
  0x34   :  { %51 = dma.hbm_to_vmem [thread:$0]  %s910_s3, 2048, %s46_s18, [#allocation6], %s780_s0, %s780_s0, %s781_s15  }
  0x35   :  { %s782_s19 = smov [#allocation8]   ;;  %s723_s23 = scalar_lea.hbm %s912_s5, 2048 }
  0x36   :  { %s59_s20 = sshll.u32 %s782_s19, 4  ;;  %p724_p10 = scmp.ne.s32.totalorder %s912_s5, %s723_s23  ;;  %s60_s20 = int_to_ptr.vmem [resolvable:$true] %s59_s20 }
  0x37   :  { %p727_p11 = scmp.lt.u32.totalorder %s723_s23, %s912_s5 }
  0x39   :  { %p729_p12 = pnand %p727_p11, %p724_p10 }
  0x3b   :  { %732 = shalt.err (!%p729_p12)
}
  0x3c   :  { %s733_s27 = scalar_lea.vmem %s60_s20, 2048  ;;  %p738_p0 = scmp.lt.s32.totalorder %s60_s20, %s60_s20 }
  0x3d   :  { %p734_p13 = scmp.ne.s32.totalorder %s60_s20, %s733_s27  ;;  %p739_p1 = scmp.lt.s32.totalorder %s733_s27, %s733_s27 }
  0x3f   :  { %p740_p2 = por %p739_p1, %p738_p0 }
  0x41   :  { %p741_p3 = pnand %p740_p2, %p734_p13 }
  0x43   :  { %744 = shalt.err (!%p741_p3)
}
  0x44   :  { %65 = dma.hbm_to_vmem [thread:$0]  %s912_s5, 2048, %s60_s20, [#allocation9], %s776_s11, %s776_s11, %s777_s12  }
  0x45   :  { %767 = dma.done.wait [#allocation3], 128  }
  0x46   :  { %768 = vsyncadd [#allocation3], 4294967168 }
  0x47   :  { %769 = dma.done.wait [#allocation6], 2176  }
  0x48   :  { %770 = vsyncadd [#allocation6], 4294965120 }
  0x49   :  { %771 = dma.done.wait [#allocation9], 2048  }
  0x4a   :  { %772 = vsyncadd [#allocation9], 4294965248  ;;  %v783_v0 = vmov 0.0   ;;  %vm784_vm0 = vmmov 0   ;;  %v612_v1 = vld [vmem:[#allocation5] sm:$0xff]   ;;  %v81_v2 = vld [vmem:[#allocation2] sm:$0xff]  ;;  %v140_v33 = vlaneseq }
  0x4b   :  { %593 = vmatprep.subr.bf16.mxu0 %v783_v0  ;;  %595 = vmatprep.mubr.msk.bf16.mxu0 %vm784_vm0, %v783_v0  ;;  %v82_v3 = vpack.c.bf16 %v81_v2, %v81_v2  ;;  %vm91_vm1 = vcmask 130048   ;;  %v613_v4 = vld [vmem:[#allocation7 + $0x4] ss:$8 sps:$4 sm:$0xff]   ;;  %v615_v5 = vld [vmem:[#allocation7] ss:$8 sps:$4 sm:$0xff]   ;;  %v785_v20 = vmov 0  }
  0x4c   :  { %594 = vmatpush3.bf16.msra.mxu0 %v612_v1  ;;  %v616_v6 = vld [vmem:[#allocation7 + $0x14] ss:$8 sps:$4 sm:$0xff]   ;;  %242 = vmatprep.subr.bf16.mxu1 %v613_v4  ;;  %v618_v7 = vld [vmem:[#allocation7 + $0x10] ss:$8 sps:$4 sm:$0xff]   ;;  %v619_v8 = vld [vmem:[#allocation7 + $0x24] ss:$8 sps:$4 sm:$0xff]  }
  0x4d   :  { %243 = vmatpush1.bf16.msra.mxu1 %v615_v5  ;;  %v621_v9 = vld [vmem:[#allocation7 + $0x20] ss:$8 sps:$4 sm:$0xff]   ;;  %v622_v10 = vld [vmem:[#allocation7 + $0x34] ss:$8 sps:$4 sm:$0xff]   ;;  %v624_v11 = vld [vmem:[#allocation7 + $0x30] ss:$8 sps:$4 sm:$0xff]   ;;  %274 = vmatprep.mubr.bf16.mxu1 %v785_v20 }
  0x4e   :  { %244 = vmatprep.subr.bf16.mxu1 %v616_v6  ;;  %v625_v12 = vld [vmem:[#allocation7 + $0x44] ss:$8 sps:$4 sm:$0xff]   ;;  %v627_v13 = vld [vmem:[#allocation7 + $0x40] ss:$8 sps:$4 sm:$0xff]   ;;  %v628_v14 = vld [vmem:[#allocation7 + $0x54] ss:$8 sps:$4 sm:$0xff]  }
  0x4f   :  { %596 = vmatmul.mubr.msk.bf16.vlgmr.msra.gmra.mrb[0].mxu0 %vm91_vm1, %v82_v3  ;;  %v630_v15 = vld [vmem:[#allocation7 + $0x50] ss:$8 sps:$4 sm:$0xff]   ;;  %v631_v16 = vld [vmem:[#allocation7 + $0x64] ss:$8 sps:$4 sm:$0xff]   ;;  %v633_v17 = vld [vmem:[#allocation7 + $0x60] ss:$8 sps:$4 sm:$0xff]  }
  0x50   :  { %v634_v18 = vld [vmem:[#allocation7 + $0x74] ss:$8 sps:$4 sm:$0xff]   ;;  %v636_v19 = vld [vmem:[#allocation7 + $0x70] ss:$8 sps:$4 sm:$0xff]   ;;  %v637_v21 = vld [vmem:[#allocation8 + $0x40] sm:$0xff]   ;;  %v141_v34 = vshrl.u32 %v140_v33, 7 }
  0x51   :  { %245 = vmatpush1.bf16.msra.mxu1 %v618_v7  ;;  %v638_v22 = vld [vmem:[#allocation8] sm:$0xff]   ;;  %v639_v23 = vld [vmem:[#allocation8 + $0x48] sm:$0xff]   ;;  %571 = vmatprep.subr.bf16.mxu0 %v637_v21  ;;  %v641_v25 = vld [vmem:[#allocation8 + $0x50] sm:$0xff]   ;;  %v786_v50 = vmov 1966171168   ;;  %s787_s29 = smov [#allocation10]  }
  0x52   :  { %246 = vmatprep.subr.bf16.mxu1 %v619_v8  ;;  %572 = vmatpush3.bf16.msra.mxu0 %v638_v22  ;;  %v640_v24 = vld [vmem:[#allocation8 + $0x8] sm:$0xff]   ;;  %v642_v26 = vld [vmem:[#allocation8 + $0x10] sm:$0xff]   ;;  %v643_v27 = vld [vmem:[#allocation8 + $0x58] sm:$0xff]   ;;  %v142_v37 = vsub.s32 0, %v141_v34  ;;  %v296_v51 = vunpack.c.l.s4 %v786_v50  ;;  %s522_s30 = sshll.u32 %s787_s29, 4  ;;  %s523_s30 = int_to_ptr.vmem [resolvable:$true] %s522_s30 }
  0x53   :  { %573 = vmatprep.subr.bf16.mxu0 %v639_v23  ;;  %v644_v28 = vld [vmem:[#allocation8 + $0x18] sm:$0xff]   ;;  %v645_v29 = vld [vmem:[#allocation8 + $0x60] sm:$0xff]   ;;  %v647_v31 = vld [vmem:[#allocation8 + $0x68] sm:$0xff]   ;;  %p750_p5 = scmp.lt.s32.totalorder %s523_s30, %s523_s30 }
  0x54   :  { %v646_v30 = vld [vmem:[#allocation8 + $0x20] sm:$0xff]   ;;  %v648_v32 = vld [vmem:[#allocation8 + $0x28] sm:$0xff]   ;;  %v136_v35 = vld [vmem:[%s909_s2] sm:$0x1]  ;;  %v297_v52 = vunpack.c.0.s8 %v296_v51 }
  0x55   :  { %247 = vmatpush1.bf16.msra.mxu1 %v621_v9  ;;  %v138_v36 = vpack.i.b16 %v136_v35, %v136_v35  ;;  %v649_v46 = vld [vmem:[#allocation8 + $0x70] sm:$0xff]   ;;  %v651_v48 = vld [vmem:[#allocation8 + $0x78] sm:$0xff]  }
  0x56   :  { %248 = vmatprep.subr.bf16.mxu1 %v622_v10  ;;  %574 = vmatpush3.bf16.msra.mxu0 %v640_v24  ;;  %v650_v47 = vld [vmem:[#allocation8 + $0x30] sm:$0xff]   ;;  %v652_v49 = vld [vmem:[#allocation8 + $0x38] sm:$0xff]   ;;  %v300_v54 = vsub.s32 %v297_v52, %v141_v34 }
  0x57   :  { %575 = vmatprep.subr.bf16.mxu0 %v641_v25  ;;  %v143_v38 = vrot.slane %v138_v36, %v142_v37  ;;  %v551_v53 = vld.sshfl [vmem:[%s911_s4] sm:$0x11 pattern:$0x75316420] }
  0x58   :  { %v294_v55 = vcombine.high %v551_v53, %v551_v53  ;;  %v301_v56 = vrot.slane %v551_v53, %v300_v54  ;;  %v552_v10 = vld [vmem:[%s913_s6] ss:$0 sm:$0xff]  ;;  %s745_s6 = scalar_lea.vmem %s523_s30, 64 }
  0x59   :  { %249 = vmatpush1.bf16.msra.mxu1 %v624_v11  ;;  %p746_p4 = scmp.ne.s32.totalorder %s523_s30, %s745_s6  ;;  %p751_p6 = scmp.lt.s32.totalorder %s745_s6, %s745_s6 }
  0x5a   :  { %250 = vmatprep.subr.bf16.mxu1 %v625_v12  ;;  %576 = vmatpush3.bf16.msra.mxu0 %v642_v26  ;;  %v308_v57 = vrot.slane %v294_v55, %v300_v54  ;;  %v310_v58 = vpack.i.b16 %v301_v56, %v301_v56 }
  0x5b   :  { %577 = vmatprep.subr.bf16.mxu0 %v643_v27  ;;  %p752_p7 = por %p751_p6, %p750_p5 }
  0x5c   :  { %v317_v59 = vpack.i.b16 %v308_v57, %v308_v57  ;;  %v315_v60 = vrot.slane %v310_v58, %v142_v37 }
  0x5d   :  { %251 = vmatpush1.bf16.msra.mxu1 %v627_v13  ;;  %p753_p8 = pnand %p752_p7, %p746_p4 }
  0x5e   :  { %252 = vmatprep.subr.bf16.mxu1 %v628_v14  ;;  %578 = vmatpush3.bf16.msra.mxu0 %v644_v28  ;;  %v322_v62 = vrot.slane %v317_v59, %v142_v37 }
  0x5f   :  { %579 = vmatprep.subr.bf16.mxu0 %v645_v29 }
  0x61   :  { %253 = vmatpush1.bf16.msra.mxu1 %v630_v15 }
  0x62   :  { %254 = vmatprep.subr.bf16.mxu1 %v631_v16  ;;  %580 = vmatpush3.bf16.msra.mxu0 %v646_v30 }
  0x63   :  { %581 = vmatprep.subr.bf16.mxu0 %v647_v31 }
  0x65   :  { %255 = vmatpush1.bf16.msra.mxu1 %v633_v17 }
  0x66   :  { %256 = vmatprep.subr.bf16.mxu1 %v634_v18  ;;  %582 = vmatpush3.bf16.msra.mxu0 %v648_v32 }
  0x67   :  { %583 = vmatprep.subr.bf16.mxu0 %v649_v46 }
  0x69   :  { %257 = vmatpush1.bf16.msra.mxu1 %v636_v19 }
  0x6a   :  { %584 = vmatpush3.bf16.msra.mxu0 %v650_v47 }
  0x6b   :  { %585 = vmatprep.subr.bf16.mxu0 %v651_v48 }
  0x6e   :  { %586 = vmatpush3.bf16.msra.mxu0 %v652_v49 }
 0x122   :  { %v129_v39 = vpop.f32.mrb[0].mxu0 }
 0x123   :  { %v135_v40 = vpack.c.bf16 %v129_v39, %v129_v39  ;;  %v597_v41 = vpop.f32.mrb[1].mxu0 }
 0x124   :  { %v132_v42 = vpop.f32.mrb[2].mxu0 }
 0x125   :  { %v144_v43 = vadd.bf16 %v143_v38, %v135_v40  ;;  %v598_v44 = vpop.f32.mrb[3].mxu0 }
 0x127   :  { %v145_v45 = vmax.bf16 %v785_v20, %v144_v43 }
 0x129   :  { %275 = vmatmul.mubr.bf16.vlgmr.msra.gmra.mrb[0].mxu1 %v145_v45 }
 0x1fc   :  { %v276_v61 = vpop.f32.mrb[0].mxu1 }
 0x1fd   :  { %v283_v63 = vpack.c.bf16 %v276_v61, %v276_v61  ;;  %v278_v0 = vpop.f32.mrb[1].mxu1 }
 0x1fe   :  { %v284_v1 = vpack.c.bf16 %v278_v0, %v278_v0  ;;  %v280_v2 = vpop.f32.mrb[2].mxu1 }
 0x1ff   :  { %v323_v3 = vadd.bf16 %v315_v60, %v283_v63  ;;  %v281_v4 = vpop.f32.mrb[3].mxu1 }
 0x200   :  { %v324_v5 = vadd.bf16 %v322_v62, %v284_v1 }
 0x201   :  { %v325_v7 = vmax.bf16 %v785_v20, %v323_v3 }
 0x202   :  { %v326_v6 = vmax.bf16 %v785_v20, %v324_v5 }
 0x204   :  { %494 = vmatprep.mubr.bf16.mxu0 %v326_v6 }
 0x205   :  { %495 = vmatmul.mubr.bf16.vlgmr.msra.gmra.mrb[4].mxu0 %v325_v7 }
 0x2d8   :  { %v587_v8 = vpop.f32.mrb[4].mxu0 }
 0x2d9   :  { %v588_v9 = vpop.f32.mrb[5].mxu0 }
 0x2da   :  { %v589_v11 = vadd.f32 %v588_v9, %v587_v8  ;;  %v590_v12 = vpop.f32.mrb[6].mxu0 }
 0x2db   :  { %v591_v13 = vpop.f32.mrb[7].mxu0 }
 0x2dc   :  { %v497_v14 = vadd.f32 %v589_v11, %v552_v10 }
 0x2de   :  { %502 = vmax.xlane.f32.xlu0 %v497_v14 }
 0x36b   :  { %v503_v15 = vpop.xlane.xlu0 %502 }
 0x36c   :  { %v504_v16 = vsub.f32 %v497_v14, %v503_v15 }
 0x36e   :  { %v505_v17 = vmul.f32 1.442695, %v504_v16 }
 0x370   :  { %653 = vpow2.f32 %v505_v17 }
 0x37a   :  { %v654_v18 = vpop.eup %653 }
 0x37b   :  { %507 = vadd.xlane.f32.xlu0 %v654_v18 }
 0x408   :  { %v508_v19 = vpop.xlane.xlu0 %507 }
 0x409   :  { %655 = vrcp.f32 %v508_v19 }
 0x413   :  { %v656_v20 = vpop.eup %655 }
 0x414   :  { %v510_v21 = vmul.f32 %v656_v20, %v508_v19 }
 0x416   :  { %v511_v22 = vsub.f32 2.0, %v510_v21 }
 0x418   :  { %v512_v23 = vmul.f32 %v656_v20, %v511_v22 }
 0x41a   :  { %v513_v24 = vmul.f32 %v654_v18, %v512_v23 }
 0x41c   :  { %v514_v25 = vpack.c.bf16 %v513_v24, %v513_v24 }
 0x41e   :  { %515 = vst [vmem:[#allocation10] sm:$0xf] %v514_v25 }
 0x41f   :  { %756 = shalt.err (!%p753_p8)
}
 0x420   :  { %s757_s10 = scalar_lea.hbm %s914_s7, 64 }
 0x421   :  { %p758_p9 = scmp.ne.s32.totalorder %s914_s7, %s757_s10  ;;  %p761_p10 = scmp.lt.u32.totalorder %s757_s10, %s914_s7 }
 0x423   :  { %p763_p11 = pnand %p761_p10, %p758_p9 }
 0x425   :  { %766 = shalt.err (!%p763_p11)
}
 0x426   :  { %525 = dma.vmem_to_hbm [thread:$0]  %s523_s30, 64, %s914_s7, [#allocation4]  }
 0x427   :  { %773 = dma.done.wait [#allocation4], 64  }
 0x428   :  { %774 = vsyncadd [#allocation4], 4294967232 }
 0x429   :  { %529 = vsyncpa [#allocation3], 1 }
 0x42a   :  { %530 = vsyncpa [#allocation6], 1 }
 0x42b   :  { %531 = vsyncpa [#allocation9], 1 }
 0x42c   :  { %532 = vsyncpa [#allocation4], 1 }

// kernel: tpu_custom_call.1
= control target key start
LH: loop header
LB: loop body
LE: loop exit
PB: predicated region body
PF: predicated region fallthrough
CT: control target
= control target key end

     0   :  { %12 = vsyncpa [#allocation3], 0  ;;  %s907_s0 = inlined_call_operand.hbm [shape: f32[8,16], index: 0, kind: input, shape index: {}]   ;;  %s908_s1 = inlined_call_operand.hbm [shape: bf16[16,128], index: 1, kind: input, shape index: {}]   ;;  %s909_s2 = inlined_call_operand.vmem [shape: bf16[1,128], index: 2, kind: input, shape index: {}]   ;;  %s910_s3 = inlined_call_operand.hbm [shape: bf16[128,256], index: 3, kind: input, shape index: {}]   ;;  %s911_s4 = inlined_call_operand.vmem [shape: bf16[1,256], index: 4, kind: input, shape index: {}]   ;;  %s912_s5 = inlined_call_operand.hbm [shape: bf16[256,128], index: 5, kind: input, shape index: {}]   ;;  %s913_s6 = inlined_call_operand.vmem [shape: f32[1,128], index: 6, kind: input, shape index: {}]   ;;  %s914_s7 = inlined_call_operand.hbm [shape: bf16[8,128], index: 7, kind: output, shape index: {}]  }
   0x1   :  { %13 = vsyncpa [#allocation6], 0 }
   0x2   :  { %14 = vsyncpa [#allocation9], 0 }
   0x3   :  { %15 = vsyncpa [#allocation4], 0  ;;  %s775_s24 = smov [#allocation5]   ;;  %s657_s28 = scalar_lea.hbm %s908_s1, 128 }
   0x4   :  { %s31_s25 = sshll.u32 %s775_s24, 4  ;;  %p658_p0 = scmp.ne.s32.totalorder %s908_s1, %s657_s28  ;;  %s32_s25 = int_to_ptr.vmem [resolvable:$true] %s31_s25 }
   0x5   :  { %p661_p1 = scmp.lt.u32.totalorder %s657_s28, %s908_s1 }
   0x7   :  { %p663_p2 = pnand %p661_p1, %p658_p0 }
   0x9   :  { %666 = shalt.err (!%p663_p2)
}
   0xa   :  { %s667_s10 = scalar_lea.vmem %s32_s25, 128  ;;  %p672_p4 = scmp.lt.s32.totalorder %s32_s25, %s32_s25 }
   0xb   :  { %p668_p3 = scmp.ne.s32.totalorder %s32_s25, %s667_s10  ;;  %p673_p5 = scmp.lt.s32.totalorder %s667_s10, %s667_s10 }
   0xd   :  { %p674_p6 = por %p673_p5, %p672_p4 }
   0xf   :  { %p675_p7 = pnand %p674_p6, %p668_p3 }
  0x11   :  { %678 = shalt.err (!%p675_p7)
}
  0x12   :  { %s776_s11 = smov 64   ;;  %s777_s12 = smov 4  }
  0x13   :  { %37 = dma.hbm_to_vmem [thread:$0]  %s908_s1, 128, %s32_s25, [#allocation6], %s776_s11, %s776_s11, %s777_s12  }
  0x14   :  { %s778_s15 = smov [#allocation2]   ;;  %s779_s17 = smov [#allocation7]  }
  0x15   :  { %s22_s16 = sshll.u32 %s778_s15, 4  ;;  %s45_s18 = sshll.u32 %s779_s17, 4  ;;  %s23_s16 = int_to_ptr.vmem [resolvable:$true] %s22_s16  ;;  %s46_s18 = int_to_ptr.vmem [resolvable:$true] %s45_s18 }
  0x16   :  { %s679_s21 = scalar_lea.hbm %s907_s0, 128 }
  0x17   :  { %p680_p8 = scmp.ne.s32.totalorder %s907_s0, %s679_s21  ;;  %p683_p9 = scmp.lt.u32.totalorder %s679_s21, %s907_s0 }
  0x19   :  { %p685_p10 = pnand %p683_p9, %p680_p8 }
  0x1b   :  { %688 = shalt.err (!%p685_p10)
}
  0x1c   :  { %s689_s1 = scalar_lea.vmem %s23_s16, 128  ;;  %p694_p12 = scmp.lt.s32.totalorder %s23_s16, %s23_s16 }
  0x1d   :  { %p690_p11 = scmp.ne.s32.totalorder %s23_s16, %s689_s1  ;;  %p695_p13 = scmp.lt.s32.totalorder %s689_s1, %s689_s1 }
  0x1f   :  { %p696_p0 = por %p695_p13, %p694_p12 }
  0x21   :  { %p697_p1 = pnand %p696_p0, %p690_p11 }
  0x23   :  { %700 = shalt.err (!%p697_p1)
}
  0x24   :  { %25 = dma.hbm_to_vmem [thread:$0]  %s907_s0, 128, %s23_s16, [#allocation3]  }
  0x25   :  { %s701_s30 = scalar_lea.hbm %s910_s3, 2048 }
  0x26   :  { %p702_p2 = scmp.ne.s32.totalorder %s910_s3, %s701_s30  ;;  %p705_p3 = scmp.lt.u32.totalorder %s701_s30, %s910_s3 }
  0x28   :  { %p707_p4 = pnand %p705_p3, %p702_p2 }
  0x2a   :  { %710 = shalt.err (!%p707_p4)
}
  0x2b   :  { %s711_s14 = scalar_lea.vmem %s46_s18, 2048  ;;  %p716_p6 = scmp.lt.s32.totalorder %s46_s18, %s46_s18 }
  0x2c   :  { %p712_p5 = scmp.ne.s32.totalorder %s46_s18, %s711_s14  ;;  %p717_p7 = scmp.lt.s32.totalorder %s711_s14, %s711_s14 }
  0x2e   :  { %p718_p8 = por %p717_p7, %p716_p6 }
  0x30   :  { %p719_p9 = pnand %p718_p8, %p712_p5 }
  0x32   :  { %722 = shalt.err (!%p719_p9)
}
  0x33   :  { %s780_s0 = smov 128   ;;  %s781_s15 = smov 8  }
  0x34   :  { %51 = dma.hbm_to_vmem [thread:$0]  %s910_s3, 2048, %s46_s18, [#allocation6], %s780_s0, %s780_s0, %s781_s15  }
  0x35   :  { %s782_s19 = smov [#allocation8]   ;;  %s723_s23 = scalar_lea.hbm %s912_s5, 2048 }
  0x36   :  { %s59_s20 = sshll.u32 %s782_s19, 4  ;;  %p724_p10 = scmp.ne.s32.totalorder %s912_s5, %s723_s23  ;;  %s60_s20 = int_to_ptr.vmem [resolvable:$true] %s59_s20 }
  0x37   :  { %p727_p11 = scmp.lt.u32.totalorder %s723_s23, %s912_s5 }
  0x39   :  { %p729_p12 = pnand %p727_p11, %p724_p10 }
  0x3b   :  { %732 = shalt.err (!%p729_p12)
}
  0x3c   :  { %s733_s27 = scalar_lea.vmem %s60_s20, 2048  ;;  %p738_p0 = scmp.lt.s32.totalorder %s60_s20, %s60_s20 }
  0x3d   :  { %p734_p13 = scmp.ne.s32.totalorder %s60_s20, %s733_s27  ;;  %p739_p1 = scmp.lt.s32.totalorder %s733_s27, %s733_s27 }
  0x3f   :  { %p740_p2 = por %p739_p1, %p738_p0 }
  0x41   :  { %p741_p3 = pnand %p740_p2, %p734_p13 }
  0x43   :  { %744 = shalt.err (!%p741_p3)
}
  0x44   :  { %65 = dma.hbm_to_vmem [thread:$0]  %s912_s5, 2048, %s60_s20, [#allocation9], %s776_s11, %s776_s11, %s777_s12  }
  0x45   :  { %767 = dma.done.wait [#allocation3], 128  }
  0x46   :  { %768 = vsyncadd [#allocation3], 4294967168 }
  0x47   :  { %769 = dma.done.wait [#allocation6], 2176  }
  0x48   :  { %770 = vsyncadd [#allocation6], 4294965120 }
  0x49   :  { %771 = dma.done.wait [#allocation9], 2048  }
  0x4a   :  { %772 = vsyncadd [#allocation9], 4294965248  ;;  %v783_v0 = vmov 0.0   ;;  %vm784_vm0 = vmmov 0   ;;  %v612_v1 = vld [vmem:[#allocation5] sm:$0xff]   ;;  %v81_v2 = vld [vmem:[#allocation2] sm:$0xff]  ;;  %v140_v33 = vlaneseq }
  0x4b   :  { %593 = vmatprep.subr.bf16.mxu0 %v783_v0  ;;  %595 = vmatprep.mubr.msk.bf16.mxu0 %vm784_vm0, %v783_v0  ;;  %v82_v3 = vpack.c.bf16 %v81_v2, %v81_v2  ;;  %vm91_vm1 = vcmask 130048   ;;  %v613_v4 = vld [vmem:[#allocation7 + $0x4] ss:$8 sps:$4 sm:$0xff]   ;;  %v615_v5 = vld [vmem:[#allocation7] ss:$8 sps:$4 sm:$0xff]   ;;  %v785_v20 = vmov 0  }
  0x4c   :  { %594 = vmatpush3.bf16.msra.mxu0 %v612_v1  ;;  %v616_v6 = vld [vmem:[#allocation7 + $0x14] ss:$8 sps:$4 sm:$0xff]   ;;  %242 = vmatprep.subr.bf16.mxu1 %v613_v4  ;;  %v618_v7 = vld [vmem:[#allocation7 + $0x10] ss:$8 sps:$4 sm:$0xff]   ;;  %v619_v8 = vld [vmem:[#allocation7 + $0x24] ss:$8 sps:$4 sm:$0xff]  }
  0x4d   :  { %243 = vmatpush1.bf16.msra.mxu1 %v615_v5  ;;  %v621_v9 = vld [vmem:[#allocation7 + $0x20] ss:$8 sps:$4 sm:$0xff]   ;;  %v622_v10 = vld [vmem:[#allocation7 + $0x34] ss:$8 sps:$4 sm:$0xff]   ;;  %v624_v11 = vld [vmem:[#allocation7 + $0x30] ss:$8 sps:$4 sm:$0xff]   ;;  %274 = vmatprep.mubr.bf16.mxu1 %v785_v20 }
  0x4e   :  { %244 = vmatprep.subr.bf16.mxu1 %v616_v6  ;;  %v625_v12 = vld [vmem:[#allocation7 + $0x44] ss:$8 sps:$4 sm:$0xff]   ;;  %v627_v13 = vld [vmem:[#allocation7 + $0x40] ss:$8 sps:$4 sm:$0xff]   ;;  %v628_v14 = vld [vmem:[#allocation7 + $0x54] ss:$8 sps:$4 sm:$0xff]  }
  0x4f   :  { %596 = vmatmul.mubr.msk.bf16.vlgmr.msra.gmra.mrb[0].mxu0 %vm91_vm1, %v82_v3  ;;  %v630_v15 = vld [vmem:[#allocation7 + $0x50] ss:$8 sps:$4 sm:$0xff]   ;;  %v631_v16 = vld [vmem:[#allocation7 + $0x64] ss:$8 sps:$4 sm:$0xff]   ;;  %v633_v17 = vld [vmem:[#allocation7 + $0x60] ss:$8 sps:$4 sm:$0xff]  }
  0x50   :  { %v634_v18 = vld [vmem:[#allocation7 + $0x74] ss:$8 sps:$4 sm:$0xff]   ;;  %v636_v19 = vld [vmem:[#allocation7 + $0x70] ss:$8 sps:$4 sm:$0xff]   ;;  %v637_v21 = vld [vmem:[#allocation8 + $0x40] sm:$0xff]   ;;  %v141_v34 = vshrl.u32 %v140_v33, 7 }
  0x51   :  { %245 = vmatpush1.bf16.msra.mxu1 %v618_v7  ;;  %v638_v22 = vld [vmem:[#allocation8] sm:$0xff]   ;;  %v639_v23 = vld [vmem:[#allocation8 + $0x48] sm:$0xff]   ;;  %571 = vmatprep.subr.bf16.mxu0 %v637_v21  ;;  %v641_v25 = vld [vmem:[#allocation8 + $0x50] sm:$0xff]   ;;  %v786_v50 = vmov 1966171168   ;;  %s787_s29 = smov [#allocation10]  }
  0x52   :  { %246 = vmatprep.subr.bf16.mxu1 %v619_v8  ;;  %572 = vmatpush3.bf16.msra.mxu0 %v638_v22  ;;  %v640_v24 = vld [vmem:[#allocation8 + $0x8] sm:$0xff]   ;;  %v642_v26 = vld [vmem:[#allocation8 + $0x10] sm:$0xff]   ;;  %v643_v27 = vld [vmem:[#allocation8 + $0x58] sm:$0xff]   ;;  %v142_v37 = vsub.s32 0, %v141_v34  ;;  %v296_v51 = vunpack.c.l.s4 %v786_v50  ;;  %s522_s30 = sshll.u32 %s787_s29, 4  ;;  %s523_s30 = int_to_ptr.vmem [resolvable:$true] %s522_s30 }
  0x53   :  { %573 = vmatprep.subr.bf16.mxu0 %v639_v23  ;;  %v644_v28 = vld [vmem:[#allocation8 + $0x18] sm:$0xff]   ;;  %v645_v29 = vld [vmem:[#allocation8 + $0x60] sm:$0xff]   ;;  %v647_v31 = vld [vmem:[#allocation8 + $0x68] sm:$0xff]   ;;  %p750_p5 = scmp.lt.s32.totalorder %s523_s30, %s523_s30 }
  0x54   :  { %v646_v30 = vld [vmem:[#allocation8 + $0x20] sm:$0xff]   ;;  %v648_v32 = vld [vmem:[#allocation8 + $0x28] sm:$0xff]   ;;  %v136_v35 = vld [vmem:[%s909_s2] sm:$0x1]  ;;  %v297_v52 = vunpack.c.0.s8 %v296_v51 }
  0x55   :  { %247 = vmatpush1.bf16.msra.mxu1 %v621_v9  ;;  %v138_v36 = vpack.i.b16 %v136_v35, %v136_v35  ;;  %v649_v46 = vld [vmem:[#allocation8 + $0x70] sm:$0xff]   ;;  %v651_v48 = vld [vmem:[#allocation8 + $0x78] sm:$0xff]  }
  0x56   :  { %248 = vmatprep.subr.bf16.mxu1 %v622_v10  ;;  %574 = vmatpush3.bf16.msra.mxu0 %v640_v24  ;;  %v650_v47 = vld [vmem:[#allocation8 + $0x30] sm:$0xff]   ;;  %v652_v49 = vld [vmem:[#allocation8 + $0x38] sm:$0xff]   ;;  %v300_v54 = vsub.s32 %v297_v52, %v141_v34 }
  0x57   :  { %575 = vmatprep.subr.bf16.mxu0 %v641_v25  ;;  %v143_v38 = vrot.slane %v138_v36, %v142_v37  ;;  %v551_v53 = vld.sshfl [vmem:[%s911_s4] sm:$0x11 pattern:$0x75316420] }
  0x58   :  { %v294_v55 = vcombine.high %v551_v53, %v551_v53  ;;  %v301_v56 = vrot.slane %v551_v53, %v300_v54  ;;  %v552_v10 = vld [vmem:[%s913_s6] ss:$0 sm:$0xff]  ;;  %s745_s6 = scalar_lea.vmem %s523_s30, 64 }
  0x59   :  { %249 = vmatpush1.bf16.msra.mxu1 %v624_v11  ;;  %p746_p4 = scmp.ne.s32.totalorder %s523_s30, %s745_s6  ;;  %p751_p6 = scmp.lt.s32.totalorder %s745_s6, %s745_s6 }
  0x5a   :  { %250 = vmatprep.subr.bf16.mxu1 %v625_v12  ;;  %576 = vmatpush3.bf16.msra.mxu0 %v642_v26  ;;  %v308_v57 = vrot.slane %v294_v55, %v300_v54  ;;  %v310_v58 = vpack.i.b16 %v301_v56, %v301_v56 }
  0x5b   :  { %577 = vmatprep.subr.bf16.mxu0 %v643_v27  ;;  %p752_p7 = por %p751_p6, %p750_p5 }
  0x5c   :  { %v317_v59 = vpack.i.b16 %v308_v57, %v308_v57  ;;  %v315_v60 = vrot.slane %v310_v58, %v142_v37 }
  0x5d   :  { %251 = vmatpush1.bf16.msra.mxu1 %v627_v13  ;;  %p753_p8 = pnand %p752_p7, %p746_p4 }
  0x5e   :  { %252 = vmatprep.subr.bf16.mxu1 %v628_v14  ;;  %578 = vmatpush3.bf16.msra.mxu0 %v644_v28  ;;  %v322_v62 = vrot.slane %v317_v59, %v142_v37 }
  0x5f   :  { %579 = vmatprep.subr.bf16.mxu0 %v645_v29 }
  0x61   :  { %253 = vmatpush1.bf16.msra.mxu1 %v630_v15 }
  0x62   :  { %254 = vmatprep.subr.bf16.mxu1 %v631_v16  ;;  %580 = vmatpush3.bf16.msra.mxu0 %v646_v30 }
  0x63   :  { %581 = vmatprep.subr.bf16.mxu0 %v647_v31 }
  0x65   :  { %255 = vmatpush1.bf16.msra.mxu1 %v633_v17 }
  0x66   :  { %256 = vmatprep.subr.bf16.mxu1 %v634_v18  ;;  %582 = vmatpush3.bf16.msra.mxu0 %v648_v32 }
  0x67   :  { %583 = vmatprep.subr.bf16.mxu0 %v649_v46 }
  0x69   :  { %257 = vmatpush1.bf16.msra.mxu1 %v636_v19 }
  0x6a   :  { %584 = vmatpush3.bf16.msra.mxu0 %v650_v47 }
  0x6b   :  { %585 = vmatprep.subr.bf16.mxu0 %v651_v48 }
  0x6e   :  { %586 = vmatpush3.bf16.msra.mxu0 %v652_v49 }
 0x122   :  { %v129_v39 = vpop.f32.mrb[0].mxu0 }
 0x123   :  { %v135_v40 = vpack.c.bf16 %v129_v39, %v129_v39  ;;  %v597_v41 = vpop.f32.mrb[1].mxu0 }
 0x124   :  { %v132_v42 = vpop.f32.mrb[2].mxu0 }
 0x125   :  { %v144_v43 = vadd.bf16 %v143_v38, %v135_v40  ;;  %v598_v44 = vpop.f32.mrb[3].mxu0 }
 0x127   :  { %v145_v45 = vmax.bf16 %v785_v20, %v144_v43 }
 0x129   :  { %275 = vmatmul.mubr.bf16.vlgmr.msra.gmra.mrb[0].mxu1 %v145_v45 }
 0x1fc   :  { %v276_v61 = vpop.f32.mrb[0].mxu1 }
 0x1fd   :  { %v283_v63 = vpack.c.bf16 %v276_v61, %v276_v61  ;;  %v278_v0 = vpop.f32.mrb[1].mxu1 }
 0x1fe   :  { %v284_v1 = vpack.c.bf16 %v278_v0, %v278_v0  ;;  %v280_v2 = vpop.f32.mrb[2].mxu1 }
 0x1ff   :  { %v323_v3 = vadd.bf16 %v315_v60, %v283_v63  ;;  %v281_v4 = vpop.f32.mrb[3].mxu1 }
 0x200   :  { %v324_v5 = vadd.bf16 %v322_v62, %v284_v1 }
 0x201   :  { %v325_v7 = vmax.bf16 %v785_v20, %v323_v3 }
 0x202   :  { %v326_v6 = vmax.bf16 %v785_v20, %v324_v5 }
 0x204   :  { %494 = vmatprep.mubr.bf16.mxu0 %v326_v6 }
 0x205   :  { %495 = vmatmul.mubr.bf16.vlgmr.msra.gmra.mrb[4].mxu0 %v325_v7 }
 0x2d8   :  { %v587_v8 = vpop.f32.mrb[4].mxu0 }
 0x2d9   :  { %v588_v9 = vpop.f32.mrb[5].mxu0 }
 0x2da   :  { %v589_v11 = vadd.f32 %v588_v9, %v587_v8  ;;  %v590_v12 = vpop.f32.mrb[6].mxu0 }
 0x2db   :  { %v591_v13 = vpop.f32.mrb[7].mxu0 }
 0x2dc   :  { %v497_v14 = vadd.f32 %v589_v11, %v552_v10 }
 0x2de   :  { %502 = vmax.xlane.f32.xlu0 %v497_v14 }
 0x36b   :  { %v503_v15 = vpop.xlane.xlu0 %502 }
 0x36c   :  { %v504_v16 = vsub.f32 %v497_v14, %v503_v15 }
 0x36e   :  { %v505_v17 = vmul.f32 1.442695, %v504_v16 }
 0x370   :  { %653 = vpow2.f32 %v505_v17 }
 0x37a   :  { %v654_v18 = vpop.eup %653 }
 0x37b   :  { %507 = vadd.xlane.f32.xlu0 %v654_v18 }
 0x408   :  { %v508_v19 = vpop.xlane.xlu0 %507 }
 0x409   :  { %655 = vrcp.f32 %v508_v19 }
 0x413   :  { %v656_v20 = vpop.eup %655 }
 0x414   :  { %v510_v21 = vmul.f32 %v656_v20, %v508_v19 }
 0x416   :  { %v511_v22 = vsub.f32 2.0, %v510_v21 }
 0x418   :  { %v512_v23 = vmul.f32 %v656_v20, %v511_v22 }
 0x41a   :  { %v513_v24 = vmul.f32 %v654_v18, %v512_v23 }
 0x41c   :  { %v514_v25 = vpack.c.bf16 %v513_v24, %v513_v24 }
 0x41e   :  { %515 = vst [vmem:[#allocation10] sm:$0xf] %v514_v25 }
 0x41f   :  { %756 = shalt.err (!%p753_p8)
}
 0x420   :  { %s757_s10 = scalar_lea.hbm %s914_s7, 64 }
 0x421   :  { %p758_p9 = scmp.ne.s32.totalorder %s914_s7, %s757_s10  ;;  %p761_p10 = scmp.lt.u32.totalorder %s757_s10, %s914_s7 }
 0x423   :  { %p763_p11 = pnand %p761_p10, %p758_p9 }
 0x425   :  { %766 = shalt.err (!%p763_p11)
}
 0x426   :  { %525 = dma.vmem_to_hbm [thread:$0]  %s523_s30, 64, %s914_s7, [#allocation4]  }
 0x427   :  { %773 = dma.done.wait [#allocation4], 64  }
 0x428   :  { %774 = vsyncadd [#allocation4], 4294967232 }
 0x429   :  { %529 = vsyncpa [#allocation3], 1 }
 0x42a   :  { %530 = vsyncpa [#allocation6], 1 }
 0x42b   :  { %531 = vsyncpa [#allocation9], 1 }
 0x42c   :  { %532 = vsyncpa [#allocation4], 1 }

</bundles_post_ra>
